<compile_context>
chip_gen: v6e
topology: v6e:2x2x1
jax: 0.10.0
libtpu: 0.0.40
codegen_flags: <defaults>
</compile_context>

<pallas_src>
import jax
import jax.numpy as jnp
from jax.experimental import pallas as pl
from jax.experimental.pallas import tpu as pltpu


def _perm_equi2_max_kernel(x_ref, wg_ref, wl_ref, b_ref, o_ref):
    # x_ref : (TB, Np, D_in)   batch tile (Np is sublane-aligned in the wrapper)
    # wg_ref: (D_in, D_out)    Gamma^T
    # wl_ref: (D_in, D_out)    -Lambda^T (pre-negated in the wrapper)
    # b_ref : (1, D_out)       Gamma bias, f32
    # o_ref : (TB, Np, D_out)
    TB, Np, D_in = x_ref.shape
    D_out = o_ref.shape[-1]

    x = x_ref[...]                                           # (TB, Np, D_in)
    xm = jnp.max(x, axis=1)                                  # (TB, D_in) per-set max (XLU)

    # Gamma(x): one big GEMM over all TB*Np rows of the tile (reshape is layout-free
    # because Np is a multiple of the sublane packing).
    g = jnp.dot(x.reshape(TB * Np, D_in), wg_ref[...],
                preferred_element_type=jnp.float32)          # (TB*Np, D_out)
    # -Lambda(xm): M = TB rows (weights already negated).
    neg_lam = jnp.dot(xm, wl_ref[...],
                      preferred_element_type=jnp.float32)    # (TB, D_out)

    corr = b_ref[...].astype(jnp.float32) + neg_lam          # bias - Lambda(xm)
    out = g.reshape(TB, Np, D_out) + corr.reshape(TB, 1, D_out)
    o_ref[...] = out.astype(o_ref.dtype)


def perm_equi2_max(x, w_gamma, b_gamma, w_lambda, *,
                   target_rows_per_tile=2048, use_bf16_matmul=False):
    """x: (B, N, D_in); w_gamma, w_lambda: (D_out, D_in) [PyTorch layout]; b_gamma: (D_out,)."""
    B, N, D_in = x.shape
    D_out = w_gamma.shape[0]
    out_dtype = x.dtype

    # Separate resident weights (no stacked-weight mid-slice), Lambda pre-negated so
    # the epilogue is a single broadcast add of (bias - Lambda(xm)).
    w_g_t = jnp.transpose(w_gamma)            # (D_in, D_out)
    w_nl_t = -jnp.transpose(w_lambda)         # (D_in, D_out)
    bias = b_gamma.reshape(1, D_out).astype(jnp.float32)

    if use_bf16_matmul:
        # Cast in the wrapper: halves the dominant x HBM->VMEM DMA and removes a
        # per-step VPU cast.  Accumulation stays f32 in-kernel (approximate numerics).
        x = x.astype(jnp.bfloat16)
        w_g_t = w_g_t.astype(jnp.bfloat16)
        w_nl_t = w_nl_t.astype(jnp.bfloat16)

    # Pad N to a multiple of the sublane packing so in-kernel reshapes are free.
    # Edge-replication keeps the per-set max exact; padded rows are sliced off after.
    sublane = 16 if x.dtype == jnp.bfloat16 else 8
    Np = ((N + sublane - 1) // sublane) * sublane
    if Np != N:
        x = jnp.pad(x, ((0, 0), (0, Np - N), (0, 0)), mode="edge")

    # ---- Generation-aware VMEM budget / tile sizing --------------------------------
    try:
        vmem_cap = int(pltpu.get_tpu_info().vmem_capacity_bytes)
    except Exception:
        vmem_cap = 64 * 1024 * 1024          # conservative (v7x-sized) fallback
    vmem_limit = min(int(vmem_cap * 0.75), 96 * 1024 * 1024)

    isx = x.dtype.itemsize
    isw = w_g_t.dtype.itemsize
    iso = jnp.dtype(out_dtype).itemsize
    # Resident (single-buffered via Buffered(1)): both weight halves + bias + slack.
    resident = 2 * D_in * D_out * isw + D_out * 4 + (1 << 16)
    # Per batch-element: double-buffered x and out tiles + f32 intermediates (g, out).
    per_batch = (2 * Np * D_in * isx
                 + 2 * Np * D_out * iso
                 + 2 * Np * D_out * 4)
    tile_budget = int(vmem_limit * 0.8) - resident
    tb_vmem = max(1, tile_budget // max(1, per_batch))

    TB = max(pl.cdiv(target_rows_per_tile, Np), 8)   # floor 8: Lambda GEMM >= 1 sublane tile
    TB = min(TB, tb_vmem)                            # VMEM cap (weights + intermediates included)
    if B > 1:
        TB = min(TB, pl.cdiv(B, 2))                  # >= 2 grid steps so both v7x TCs get work
    TB = max(1, min(TB, B))
    grid = (pl.cdiv(B, TB),)

    out = pl.pallas_call(
        _perm_equi2_max_kernel,
        out_shape=jax.ShapeDtypeStruct((B, Np, D_out), out_dtype),
        grid_spec=pltpu.PrefetchScalarGridSpec(
            num_scalar_prefetch=0,
            grid=grid,
            in_specs=[
                pl.BlockSpec((TB, Np, D_in), lambda i: (i, 0, 0)),
                pl.BlockSpec((D_in, D_out), lambda i: (0, 0),
                             pipeline_mode=pl.Buffered(1)),
                pl.BlockSpec((D_in, D_out), lambda i: (0, 0),
                             pipeline_mode=pl.Buffered(1)),
                pl.BlockSpec((1, D_out), lambda i: (0, 0),
                             pipeline_mode=pl.Buffered(1)),
            ],
            out_specs=pl.BlockSpec((TB, Np, D_out), lambda i: (i, 0, 0)),
        ),
        compiler_params=pltpu.CompilerParams(
            dimension_semantics=("parallel",),
            vmem_limit_bytes=int(vmem_limit),
        ),
    )(x, w_g_t, w_nl_t, bias)

    if Np != N:
        out = out[:, :N, :]   # only on the unaligned-N fallback path
    return out


def perm_equi2_max_ref(x, w_gamma, b_gamma, w_lambda):
    """Pure-JAX reference mirroring the PyTorch forward."""
    xm = jnp.max(x, axis=1, keepdims=True)                 # (B, 1, D_in)
    lam = jnp.einsum("bnd,od->bno", xm, w_lambda)          # (B, 1, D_out)
    gam = jnp.einsum("bnd,od->bno", x, w_gamma) + b_gamma  # (B, N, D_out)
    return gam - lam


if __name__ == "__main__":
    keys = jax.random.split(jax.random.PRNGKey(0), 8)

    # ---- Test 1: aligned shapes, exact f32 path -----------------------------------
    B, N, D_in, D_out = 2, 8, 32, 32
    bound = 1.0 / (D_in ** 0.5)
    x = jax.random.normal(keys[0], (B, N, D_in), dtype=jnp.float32)
    w_gamma = jax.random.uniform(keys[1], (D_out, D_in), jnp.float32, -bound, bound)
    b_gamma = jax.random.uniform(keys[2], (D_out,), jnp.float32, -bound, bound)
    w_lambda = jax.random.uniform(keys[3], (D_out, D_in), jnp.float32, -bound, bound)

    out = jax.block_until_ready(jax.jit(perm_equi2_max)(x, w_gamma, b_gamma, w_lambda))
    ref = perm_equi2_max_ref(x, w_gamma, b_gamma, w_lambda)
    assert out.shape == (B, N, D_out)
    assert jnp.allclose(out, ref, atol=1e-5, rtol=1e-5), "f32 path mismatch vs reference"

    # ---- Test 2: unaligned N, ragged B, small D_out (pad / masked-store / OOB paths)
    B2, N2, Di2, Do2 = 3, 5, 24, 20
    bound2 = 1.0 / (Di2 ** 0.5)
    x2 = jax.random.normal(keys[4], (B2, N2, Di2), dtype=jnp.float32)
    wg2 = jax.random.uniform(keys[5], (Do2, Di2), jnp.float32, -bound2, bound2)
    bg2 = jax.random.uniform(keys[6], (Do2,), jnp.float32, -bound2, bound2)
    wl2 = jax.random.uniform(keys[7], (Do2, Di2), jnp.float32, -bound2, bound2)

    out2 = jax.block_until_ready(jax.jit(perm_equi2_max)(x2, wg2, bg2, wl2))
    ref2 = perm_equi2_max_ref(x2, wg2, bg2, wl2)
    assert out2.shape == (B2, N2, Do2)
    assert jnp.allclose(out2, ref2, atol=1e-5, rtol=1e-5), "unaligned-shape mismatch vs reference"

    # ---- Test 3: bf16 MXU-input path (looser tolerance) ---------------------------
    out_bf16 = jax.block_until_ready(
        jax.jit(lambda a, b, c, d: perm_equi2_max(a, b, c, d, use_bf16_matmul=True))(
            x, w_gamma, b_gamma, w_lambda))
    assert out_bf16.shape == (B, N, D_out)
    assert jnp.allclose(out_bf16, ref, atol=5e-2, rtol=5e-2), "bf16 path mismatch vs reference"

    print("KERNEL_OK")
</pallas_src>

<mosaic_0001>
module attributes {stable_mosaic.version = 11 : i64} {
  func.func @_perm_equi2_max_kernel(%arg0: i32, %arg1: memref<1x8x32xf32, #tpu.memory_space<vmem>>, %arg2: memref<32x32xf32, #tpu.memory_space<vmem>>, %arg3: memref<32x32xf32, #tpu.memory_space<vmem>>, %arg4: memref<1x32xf32, #tpu.memory_space<vmem>>, %arg5: memref<1x8x32xf32, #tpu.memory_space<vmem>>) attributes {dimension_semantics = [#tpu.dimension_semantics<parallel>], iteration_bounds = array<i64: 2>, scalar_prefetch = 0 : i64, scratch_operands = 0 : i64, tpu.core_type = #tpu.core_type<tc>, window_params = [{transform_indices = @transform_0, window_bounds = array<i64: 1, 8, 32>}, {pipeline_mode = #tpu.pipeline_mode<synchronous>, transform_indices = @transform_1, window_bounds = array<i64: 32, 32>}, {pipeline_mode = #tpu.pipeline_mode<synchronous>, transform_indices = @transform_2, window_bounds = array<i64: 32, 32>}, {pipeline_mode = #tpu.pipeline_mode<synchronous>, transform_indices = @transform_3, window_bounds = array<i64: 1, 32>}, {transform_indices = @transform_4, window_bounds = array<i64: 1, 8, 32>}]} {
    %c0 = arith.constant 0 : index
    %c0_0 = arith.constant 0 : index
    %c0_1 = arith.constant 0 : index
    %0 = vector.load %arg1[%c0, %c0_0, %c0_1] : memref<1x8x32xf32, #tpu.memory_space<vmem>>, vector<1x8x32xf32>
    %cst = arith.constant dense<0xFF800000> : vector<1x32xf32>
    %1 = vector.multi_reduction <maximumf>, %0, %cst [1] : vector<1x8x32xf32> to vector<1x32xf32>
    %2 = vector.shape_cast %0 : vector<1x8x32xf32> to vector<8x32xf32>
    %c0_2 = arith.constant 0 : index
    %c0_3 = arith.constant 0 : index
    %3 = vector.load %arg2[%c0_2, %c0_3] : memref<32x32xf32, #tpu.memory_space<vmem>>, vector<32x32xf32>
    %cst_4 = arith.constant dense<0.000000e+00> : vector<8x32xf32>
    %4 = tpu.matmul %2, %3, %cst_4 {dimension_numbers = #tpu.dot_dimension_numbers<[1], [0], [0], [1], [0, 0, 1, 1], [], []>} : vector<8x32xf32>, vector<32x32xf32>, vector<8x32xf32> -> vector<8x32xf32>
    %c0_5 = arith.constant 0 : index
    %c0_6 = arith.constant 0 : index
    %5 = vector.load %arg3[%c0_5, %c0_6] : memref<32x32xf32, #tpu.memory_space<vmem>>, vector<32x32xf32>
    %cst_7 = arith.constant dense<0.000000e+00> : vector<1x32xf32>
    %6 = tpu.matmul %1, %5, %cst_7 {dimension_numbers = #tpu.dot_dimension_numbers<[1], [0], [0], [1], [0, 0, 1, 1], [], []>} : vector<1x32xf32>, vector<32x32xf32>, vector<1x32xf32> -> vector<1x32xf32>
    %c0_8 = arith.constant 0 : index
    %c0_9 = arith.constant 0 : index
    %7 = vector.load %arg4[%c0_8, %c0_9] : memref<1x32xf32, #tpu.memory_space<vmem>>, vector<1x32xf32>
    %8 = arith.addf %7, %6 : vector<1x32xf32>
    %9 = vector.shape_cast %4 : vector<8x32xf32> to vector<1x8x32xf32>
    %10 = vector.shape_cast %8 : vector<1x32xf32> to vector<1x1x32xf32>
    %11 = vector.broadcast %10 : vector<1x1x32xf32> to vector<1x8x32xf32>
    %12 = arith.addf %9, %11 : vector<1x8x32xf32>
    %c0_10 = arith.constant 0 : index
    %c0_11 = arith.constant 0 : index
    %c0_12 = arith.constant 0 : index
    %13 = vector.load %arg5[%c0_10, %c0_11, %c0_12] : memref<1x8x32xf32, #tpu.memory_space<vmem>>, vector<1x8x32xf32>
    tpu.vector_store %arg5[%c0_10, %c0_11, %c0_12], %12 {strides = array<i32>} : memref<1x8x32xf32, #tpu.memory_space<vmem>>, vector<1x8x32xf32>,
    return
  }
  func.func @transform_0(%arg0: i32) -> (i32, i32, i32) {
    %c0_i32 = arith.constant 0 : i32
    %c0_i32_0 = arith.constant 0 : i32
    %c0_i32_1 = arith.constant 0 : i32
    return %arg0, %c0_i32, %c0_i32_0 : i32, i32, i32
  }
  func.func @transform_1(%arg0: i32) -> (i32, i32) {
    %c0_i32 = arith.constant 0 : i32
    %c0_i32_0 = arith.constant 0 : i32
    %c0_i32_1 = arith.constant 0 : i32
    return %c0_i32, %c0_i32_0 : i32, i32
  }
  func.func @transform_2(%arg0: i32) -> (i32, i32) {
    %c0_i32 = arith.constant 0 : i32
    %c0_i32_0 = arith.constant 0 : i32
    %c0_i32_1 = arith.constant 0 : i32
    return %c0_i32, %c0_i32_0 : i32, i32
  }
  func.func @transform_3(%arg0: i32) -> (i32, i32) {
    %c0_i32 = arith.constant 0 : i32
    %c0_i32_0 = arith.constant 0 : i32
    %c0_i32_1 = arith.constant 0 : i32
    return %c0_i32, %c0_i32_0 : i32, i32
  }
  func.func @transform_4(%arg0: i32) -> (i32, i32, i32) {
    %c0_i32 = arith.constant 0 : i32
    %c0_i32_0 = arith.constant 0 : i32
    %c0_i32_1 = arith.constant 0 : i32
    return %arg0, %c0_i32, %c0_i32_0 : i32, i32, i32
  }
}

</mosaic_0001>

<bundles_post_ra>
// kernel: perm_equi2_max.1
= control target key start
LH: loop header
LB: loop body
LE: loop exit
PB: predicated region body
PF: predicated region fallthrough
CT: control target
= control target key end

     0   :  { %9 = vsyncpa [#allocation3], 0  ;;  %s732_s0 = inlined_call_operand.vmem [shape: f32[2,8,32], index: 0, kind: input, shape index: {}]   ;;  %s733_s1 = inlined_call_operand.vmem [shape: f32[32,32], index: 1, kind: input, shape index: {}]   ;;  %s734_s2 = inlined_call_operand.vmem [shape: f32[32,32], index: 2, kind: input, shape index: {}]   ;;  %s735_s3 = inlined_call_operand.vmem [shape: f32[1,32], index: 3, kind: input, shape index: {}]   ;;  %s736_s4 = inlined_call_operand.hbm [shape: f32[2,8,32], index: 4, kind: output, shape index: {}]  }
   0x1   :  { %11 = vsyncpa [#allocation3 + $0x1], 0  ;;  %s614_s15 = smov 0   ;;  %s616_s16 = smov 0  }
   0x2   :  { %s618_s17 = smov 0   ;;  %s620_s18 = smov 0  }
   0x3 LB: > { %s635_s19 = sadd.s32 4294967295, %s584_s18   ;;  %s439_s20 = sadd.s32 4294967294, %s584_s18   ;;  %s584_s18 = sphi %s620_s18, %s742_s18   ;;  %s580_s17 = sphi %s618_s17, %s741_s17   ;;  %s576_s16 = sphi %s616_s16, %s740_s16   ;;  %s572_s15 = sphi %s614_s15, %s739_s15  }
   0x4   : > { %s639_s21 = sadd.s32 1, %s584_s18   ;;  %s113_s22 = sadd.s32 1, %s580_s17 }
   0x5   : > { %s110_s23 = ssub.s32 %s584_s18, %s639_s21  ;;  %p123_p0 = scmp.ne.s32.totalorder %s580_s17, %s576_s16 }
   0x6   : > { %p111_p1 = scmp.eq.s32.totalorder %s110_s23, 0  ;;  %p124_p2 = scmp.eq.s32.totalorder %s635_s19, 1 }
   0x7   : > { %p129_p3 = scmp.ne.s32.totalorder %s576_s16, %s572_s15  ;;  %p130_p4 = scmp.eq.s32.totalorder %s439_s20, 1 }
   0x8   : > { %s650_s24 = scalar_select %p111_p1, %s580_s17, %s113_s22  }
   0x9   : > { %p652_p5 = por %p124_p2, %p123_p0  ;;  %p656_p6 = por %p130_p4, %p129_p3 }
   0xa   : > { %p442_p7 = scmp.ge.s32.totalorder %s584_s18, 1  ;;  %p164_p8 = scmp.lt.s32.totalorder %s584_s18, 3 }
   0xc   : > { %p165_p9 = pnand %p442_p7, %p164_p8 }
   0xd   : > { %p189_p10 = scmp.lt.s32.totalorder (!%p165_p9), %s635_s19, 1  ;;  %s186_s5 = sand.u32 (!%p165_p9), 1, %s576_s16  }
   0xe   : > { %168 = sbr.rel (%p165_p9) target bundleno = 249 (0xf9), region = 36  ;;  %s443_s6 = sshll.u32 (!%p165_p9), %s186_s5, 3 }
   0xf   : > { %s188_s10 = scalar_lea.vmem (!%p165_p9), [#allocation2], %s443_s6  ;;  %s367_s20 = scalar_lea.sflag (!%p165_p9), [#allocation3], %s186_s5 }
  0x10   : > { %s380_s11 = sshll.u32 (!%p165_p9), %s188_s10, 4  ;;  %s588_s23 = smov (!%p165_p9), [#allocation2]   ;;  %s381_s11 = int_to_ptr.vmem [resolvable:$true] %s380_s11 }
  0x11   : > { %s524_s22 = scalar_lea.vmem (!%p165_p9), %s381_s11, 128  ;;  %s528_s27 = sshll.u32 (!%p165_p9), %s588_s23, 4  ;;  %s529_s27 = int_to_ptr.vmem [resolvable:$false] %s528_s27 }
  0x12   : > { %p525_p11 = scmp.ne.s32.totalorder (!%p165_p9), %s381_s11, %s524_s22  ;;  %p531_p0 = scmp.lt.s32.totalorder (!%p165_p9), %s381_s11, %s529_s27 }
  0x13   : > { %v282_v0 = vld [vmem:[%s734_s2 + $0x18] sm:$0xff]  ;;  %v586_v2 = vmov 0.0   ;;  %v281_v3 = vld [vmem:[%s734_s2 + $0x10] sm:$0xff]  ;;  %s190_s9 = scalar_select %p189_p10, %s635_s19, 1  ;;  %v280_v5 = vld [vmem:[%s734_s2 + $0x8] sm:$0xff]  ;;  %vm194_vm0 = vcmask 261120   ;;  %v359_v18 = vlaneseq }
  0x14   : > { %v205_v1 = vld [vmem:[%s733_s1 + $0x18] sm:$0xff]  ;;  %472 = vmatprep.subr.mxu1 %v586_v2  ;;  %461 = vmatprep.subr.mxu0 %v586_v2  ;;  %v204_v4 = vld [vmem:[%s733_s1 + $0x10] sm:$0xff]  ;;  %v203_v6 = vld [vmem:[%s733_s1 + $0x8] sm:$0xff]  ;;  %vm587_vm1 = vmmov 0   ;;  %p526_p12 = pnand %p525_p11, %p652_p5 }
  0x15   : > { %473 = vmatpush3.msra.mxu1 %v282_v0  ;;  %462 = vmatpush3.msra.mxu0 %v205_v1  ;;  %s444_s14 = sshll.u32 %s190_s9, 3  ;;  %v279_v7 = vld [vmem:[%s734_s2] sm:$0xff]  ;;  %v360_v20 = vshrl.u32 %v359_v18, 7  ;;  %s448_s9 = sshll.u32 %s635_s19, 7 }
  0x16   : > { %474 = vmatprep.subr.mxu1 %v586_v2  ;;  %463 = vmatprep.subr.mxu0 %v586_v2  ;;  %s192_s28 = scalar_lea.vmem %s732_s0, %s444_s14  ;;  %v202_v9 = vld [vmem:[%s733_s1] sm:$0xff]  ;;  %s378_s14 = scalar_lea.hbm %s736_s4, %s448_s9 }
  0x17   : > { %475 = vmatpush3.msra.mxu1 %v281_v3  ;;  %464 = vmatpush3.msra.mxu0 %v204_v4  ;;  %v193_v8 = vld [vmem:[%s192_s28] sm:$0xff]  ;;  %v361_v22 = vsub.s32 0, %v360_v20  ;;  %p527_p13 = pneg %p526_p12  ;;  %s530_s19 = scalar_lea.vmem %s529_s27, 256 }
  0x18   : > { %476 = vmatprep.subr.mxu1 %v586_v2  ;;  %465 = vmatprep.subr.mxu0 %v586_v2  ;;  %v195_v10 = vsel %vm194_vm0, %v193_v8, -inf  ;;  %v356_v21 = vld [vmem:[%s735_s3] sm:$0x1]  ;;  %p532_p1 = scmp.lt.s32.totalorder %s530_s19, %s524_s22 }
  0x19   : > { %477 = vmatpush3.msra.mxu1 %v280_v5  ;;  %466 = vmatpush3.msra.mxu0 %v203_v6  ;;  %v196_v11 = vrot.slane %v195_v10, 4 }
  0x1a   : > { %478 = vmatprep.subr.mxu1 %v586_v2  ;;  %480 = vmatprep.mubr.msk.f32.mxu1 %vm587_vm1, %v586_v2  ;;  %p533_p2 = por %p532_p1, %p531_p0 }
  0x1b   : > { %479 = vmatpush3.msra.mxu1 %v279_v7  ;;  %467 = vmatprep.subr.mxu0 %v586_v2  ;;  %v197_v12 = vmax.f32 %v195_v10, %v196_v11 }
  0x1c   : > { %468 = vmatpush3.msra.mxu0 %v202_v9  ;;  %469 = vmatprep.mubr.msk.f32.mxu0 %vm587_vm1, %v586_v2  ;;  %p534_p3 = pnand %p533_p2, %p527_p13 }
  0x1d   : > { %470 = vmatmul.mubr.msk.f32.vlgmr.msra.gmra.mxu0 %vm194_vm0, %v193_v8  ;;  %v198_v13 = vrot.slane %v197_v12, 2 }
  0x1f   : > { %v199_v14 = vmax.f32 %v197_v12, %v198_v13 }
  0x21   : > { %v200_v15 = vrot.slane %v199_v14, 1 }
  0x23   : > { %v201_v16 = vmax.f32 %v199_v14, %v200_v15 }
  0x25   : > { %481 = vmatmul.mubr.msk.f32.vlgmr.msra.gmra.mxu1 %vm194_vm0, %v201_v16 }
  0xdd   : > { %v275_v17 = vpop.f32.mrf.mxu0 }
  0xdf   : > { %v471_v19 = vpop.f32.mrf.mxu0 }
  0xe5   : > { %v352_v23 = vpop.f32.mrf.mxu1 }
  0xe6   : > { %v357_v24 = vadd.f32 %v356_v21, %v352_v23 }
  0xe7   : > { %v482_v25 = vpop.f32.mrf.mxu1 }
  0xe8   : > { %v362_v26 = vrot.slane %v357_v24, %v361_v22 }
  0xea   : > { %v364_v27 = vadd.f32 %v362_v26, %v275_v17 }
  0xec   : > { %365 = vst.msk [vmem:[%s188_s10] sm:$0xff] %vm194_vm0, %v364_v27 }
  0xed   : > { %537 = shalt.err (!%p534_p3)
}
  0xee   : > { %s538_s28 = scalar_lea.hbm %s378_s14, 128  ;;  %s542_s5 = scalar_lea.hbm %s736_s4, 256 }
  0xef   : > { %p539_p4 = scmp.ne.s32.totalorder %s378_s14, %s538_s28  ;;  %p543_p9 = scmp.lt.s32.totalorder %s378_s14, %s736_s4 }
  0xf0   : > { %p544_p10 = scmp.lt.s32.totalorder %s542_s5, %s538_s28 }
  0xf1   : > { %p540_p7 = pnand %p539_p4, %p652_p5 }
  0xf2   : > { %p545_p11 = por %p544_p10, %p543_p9 }
  0xf3   : > { %p541_p8 = pneg %p540_p7 }
  0xf5   : > { %p546_p12 = pnand %p545_p11, %p541_p8 }
  0xf7   : > { %549 = shalt.err (!%p546_p12)
}
  0xf8   : > { %483 = dma.vmem_to_hbm [thread:$0]  (%p652_p5), %s381_s11, 128, %s378_s14, %s367_s20  }
  0xf9 PF: > { %p489_p13 = scmp.ge.s32.totalorder %s584_s18, 2  ;;  %s392_s8 = sand.u32 1, %s572_s15  }
  0xfa   : > { %s393_s9 = scalar_lea.sflag [#allocation3], %s392_s8 }
  0xfb   : > { %p486_p0 = pnand %p489_p13, %p656_p6 }
  0xfd   : > { %p487_p1 = pneg %p486_p0 }
  0xff   : > { %567 = dma.done.wait (%p487_p1), %s393_s9, 128  }
 0x100   : > { %569 = vsyncadd (%p487_p1), %s393_s9, 4294967168  ;;  %p14_p2 = scmp.ge.s32.totalorder %s639_s21, 4   ;;  %s739_s15 = smov %s576_s16 }
 0x101   : > { %s740_s16 = smov %s580_s17  ;;  %s741_s17 = smov %s650_s24 }
 0x102   : > { %s742_s18 = smov %s639_s21  ;;  %16 = sbr.rel (!%p14_p2) target bundleno = 3 (0x3), region = 71 }
 0x107   :  { %398 = vsyncpa [#allocation3], 1 }
 0x108   :  { %400 = vsyncpa [#allocation3 + $0x1], 1 }

</bundles_post_ra>
